<compile_context>
chip_gen: v7x
topology: tpu7x:2x2x1
jax: 0.10.0
libtpu: 0.0.40
codegen_flags: <defaults>
</compile_context>

<pallas_src>
import functools

import jax
import jax.numpy as jnp
from jax.experimental import pallas as pl
from jax.experimental.pallas import tpu as pltpu


def _swiglu_ffn_kernel(x_ref, w1_ref, b1_ref, w3_ref, b3_ref, w2_ref, b2_ref,
                       y_ref, o_ref, acc_ref):
    # Blocks:
    #   x_ref  : (tm, dim)      w1_ref/w3_ref : (dim, th)    b1_ref/b3_ref : (1, th)
    #   w2_ref : (th, dim)      b2_ref        : (1, dim)
    #   y_ref  : (tm, dim)      o_ref         : (tm, dim)    acc_ref       : (tm, dim) f32
    j = pl.program_id(1)

    @pl.when(j == 0)
    def _():
        acc_ref[...] = jnp.zeros_like(acc_ref)

    x = x_ref[...]  # keep native dtype for the MXU
    h1 = jnp.dot(x, w1_ref[...], preferred_element_type=jnp.float32)
    h1 = h1 + b1_ref[...].astype(jnp.float32)
    h3 = jnp.dot(x, w3_ref[...], preferred_element_type=jnp.float32)
    h3 = h3 + b3_ref[...].astype(jnp.float32)

    # act = w3(x) * sigmoid(w1(x)) * w3(x)   (matches the PyTorch module exactly)
    act = h3 * jax.nn.sigmoid(h1) * h3

    acc_ref[...] += jnp.dot(act.astype(w2_ref.dtype), w2_ref[...],
                            preferred_element_type=jnp.float32)

    @pl.when(j == pl.num_programs(1) - 1)
    def _():
        o_ref[...] = (acc_ref[...]
                      + b2_ref[...].astype(jnp.float32)
                      + y_ref[...].astype(jnp.float32)).astype(o_ref.dtype)


def ffn_swiglu_forward(x, y, w1, b1, w3, b3, w2, b2, *, batch, seq):
    """x: (batch*seq, dim); y: (batch, seq, dim); weights in (in, out) layout.

    Returns (batch, seq, dim) = y + w2( w3(x)^2 * sigmoid(w1(x)) ).
    """
    M, dim = x.shape
    assert M == batch * seq
    hidden = w1.shape[1]
    assert w1.shape == (dim, hidden) and w3.shape == (dim, hidden)
    assert w2.shape == (hidden, dim)

    # Biases as (1, N) rows so they tile cleanly on the (sublane, lane) grid.
    b1r = b1.reshape(1, hidden)
    b3r = b3.reshape(1, hidden)
    b2r = b2.reshape(1, dim)
    y2d = y.reshape(M, dim)

    # Tile sizes: keep tiles as large as fits; M is tiny in decode-style shapes.
    tm = M if M <= 256 else 256
    assert M % tm == 0, "batch*seq must be divisible by the row tile"
    th = hidden if hidden <= 256 else 256
    assert hidden % th == 0, "hidden_dim must be divisible by the hidden tile"

    grid = (M // tm, hidden // th)

    out2d = pl.pallas_call(
        _swiglu_ffn_kernel,
        out_shape=jax.ShapeDtypeStruct((M, dim), x.dtype),
        grid_spec=pltpu.PrefetchScalarGridSpec(
            num_scalar_prefetch=0,
            grid=grid,
            in_specs=[
                pl.BlockSpec((tm, dim), lambda i, j: (i, 0)),    # x
                pl.BlockSpec((dim, th), lambda i, j: (0, j)),    # w1
                pl.BlockSpec((1, th),   lambda i, j: (0, j)),    # b1
                pl.BlockSpec((dim, th), lambda i, j: (0, j)),    # w3
                pl.BlockSpec((1, th),   lambda i, j: (0, j)),    # b3
                pl.BlockSpec((th, dim), lambda i, j: (j, 0)),    # w2
                pl.BlockSpec((1, dim),  lambda i, j: (0, 0)),    # b2
                pl.BlockSpec((tm, dim), lambda i, j: (i, 0)),    # y (residual)
            ],
            out_specs=pl.BlockSpec((tm, dim), lambda i, j: (i, 0)),
            scratch_shapes=[pltpu.VMEM((tm, dim), jnp.float32)],
        ),
        compiler_params=pltpu.CompilerParams(
            dimension_semantics=("parallel", "arbitrary"),
        ),
    )(x, w1, b1r, w3, b3r, w2, b2r, y2d)

    return out2d.reshape(batch, seq, dim)


def _reference(x, y, w1, b1, w3, b3, w2, b2, *, batch, seq):
    h1 = jnp.dot(x, w1, preferred_element_type=jnp.float32) + b1
    h3 = jnp.dot(x, w3, preferred_element_type=jnp.float32) + b3
    act = h3 * jax.nn.sigmoid(h1) * h3
    out = jnp.dot(act, w2, preferred_element_type=jnp.float32) + b2
    return y + out.reshape(batch, seq, -1).astype(y.dtype)


def _module_hidden_dim(hidden_dim, multiple_of=256, ffn_dim_multiplier=4):
    hidden_dim = int(2 * hidden_dim / 3)
    if ffn_dim_multiplier is not None:
        hidden_dim = int(ffn_dim_multiplier * hidden_dim)
    return multiple_of * ((hidden_dim + multiple_of - 1) // multiple_of)


if __name__ == "__main__":
    # Small deterministic shapes consistent with the module.
    batch, seq, dim, hidden_param = 2, 8, 128, 128
    hidden = _module_hidden_dim(hidden_param)     # -> 512 (multiple of 256)
    M = batch * seq

    key = jax.random.PRNGKey(0)
    kx, ky, k1, k1b, k3, k3b, k2, k2b = jax.random.split(key, 8)
    x = jax.random.normal(kx, (M, dim), dtype=jnp.float32)
    y = jax.random.normal(ky, (batch, seq, dim), dtype=jnp.float32)
    w1 = jax.random.normal(k1, (dim, hidden), dtype=jnp.float32) / jnp.sqrt(dim)
    b1 = 0.1 * jax.random.normal(k1b, (hidden,), dtype=jnp.float32)
    w3 = jax.random.normal(k3, (dim, hidden), dtype=jnp.float32) / jnp.sqrt(dim)
    b3 = 0.1 * jax.random.normal(k3b, (hidden,), dtype=jnp.float32)
    w2 = jax.random.normal(k2, (hidden, dim), dtype=jnp.float32) / jnp.sqrt(hidden)
    b2 = 0.1 * jax.random.normal(k2b, (dim,), dtype=jnp.float32)

    fwd = jax.jit(functools.partial(ffn_swiglu_forward, batch=batch, seq=seq))
    out = fwd(x, y, w1, b1, w3, b3, w2, b2)
    jax.block_until_ready(out)

    ref = _reference(x, y, w1, b1, w3, b3, w2, b2, batch=batch, seq=seq)
    assert out.shape == (batch, seq, dim)
    assert jnp.allclose(out, ref, atol=2e-3, rtol=2e-3), (
        float(jnp.max(jnp.abs(out - ref))))

    print("KERNEL_OK")
</pallas_src>

<mosaic_0001>
module attributes {stable_mosaic.version = 11 : i64} {
  func.func @_swiglu_ffn_kernel(%arg0: i32, %arg1: i32, %arg2: memref<16x128xf32, #tpu.memory_space<vmem>>, %arg3: memref<128x256xf32, #tpu.memory_space<vmem>>, %arg4: memref<1x256xf32, #tpu.memory_space<vmem>>, %arg5: memref<128x256xf32, #tpu.memory_space<vmem>>, %arg6: memref<1x256xf32, #tpu.memory_space<vmem>>, %arg7: memref<256x128xf32, #tpu.memory_space<vmem>>, %arg8: memref<1x128xf32, #tpu.memory_space<vmem>>, %arg9: memref<16x128xf32, #tpu.memory_space<vmem>>, %arg10: memref<16x128xf32, #tpu.memory_space<vmem>>, %arg11: memref<16x128xf32, #tpu.memory_space<vmem>>) attributes {dimension_semantics = [#tpu.dimension_semantics<parallel>, #tpu.dimension_semantics<arbitrary>], iteration_bounds = array<i64: 1, 2>, scalar_prefetch = 0 : i64, scratch_operands = 1 : i64, tpu.core_type = #tpu.core_type<tc>, window_params = [{transform_indices = @transform_0, window_bounds = array<i64: 16, 128>}, {transform_indices = @transform_1, window_bounds = array<i64: 128, 256>}, {transform_indices = @transform_2, window_bounds = array<i64: 1, 256>}, {transform_indices = @transform_3, window_bounds = array<i64: 128, 256>}, {transform_indices = @transform_4, window_bounds = array<i64: 1, 256>}, {transform_indices = @transform_5, window_bounds = array<i64: 256, 128>}, {pipeline_mode = #tpu.pipeline_mode<synchronous>, transform_indices = @transform_6, window_bounds = array<i64: 1, 128>}, {transform_indices = @transform_7, window_bounds = array<i64: 16, 128>}, {transform_indices = @transform_8, window_bounds = array<i64: 16, 128>}]} {
    %c0_i32 = arith.constant 0 : i32
    %0 = arith.cmpi eq, %arg1, %c0_i32 : i32
    %1 = arith.extui %0 : i1 to i32
    %c0_i32_0 = arith.constant 0 : i32
    %2 = arith.cmpi ne, %1, %c0_i32_0 : i32
    scf.if %2 {
      %cst_20 = arith.constant 0.000000e+00 : f32
      %29 = vector.broadcast %cst_20 : f32 to vector<16x128xf32>
      %c0_21 = arith.constant 0 : index
      %c0_22 = arith.constant 0 : index
      %30 = vector.load %arg11[%c0_21, %c0_22] : memref<16x128xf32, #tpu.memory_space<vmem>>, vector<16x128xf32>
      tpu.vector_store %arg11[%c0_21, %c0_22], %29 {strides = array<i32>} : memref<16x128xf32, #tpu.memory_space<vmem>>, vector<16x128xf32>,
    } else {
    }
    %c0 = arith.constant 0 : index
    %c0_1 = arith.constant 0 : index
    %3 = vector.load %arg2[%c0, %c0_1] : memref<16x128xf32, #tpu.memory_space<vmem>>, vector<16x128xf32>
    %c0_2 = arith.constant 0 : index
    %c0_3 = arith.constant 0 : index
    %4 = vector.load %arg3[%c0_2, %c0_3] : memref<128x256xf32, #tpu.memory_space<vmem>>, vector<128x256xf32>
    %cst = arith.constant dense<0.000000e+00> : vector<16x256xf32>
    %5 = tpu.matmul %3, %4, %cst {dimension_numbers = #tpu.dot_dimension_numbers<[1], [0], [0], [1], [0, 0, 1, 1], [], []>} : vector<16x128xf32>, vector<128x256xf32>, vector<16x256xf32> -> vector<16x256xf32>
    %c0_4 = arith.constant 0 : index
    %c0_5 = arith.constant 0 : index
    %6 = vector.load %arg4[%c0_4, %c0_5] : memref<1x256xf32, #tpu.memory_space<vmem>>, vector<1x256xf32>
    %7 = vector.broadcast %6 : vector<1x256xf32> to vector<16x256xf32>
    %8 = arith.addf %5, %7 : vector<16x256xf32>
    %c0_6 = arith.constant 0 : index
    %c0_7 = arith.constant 0 : index
    %9 = vector.load %arg5[%c0_6, %c0_7] : memref<128x256xf32, #tpu.memory_space<vmem>>, vector<128x256xf32>
    %cst_8 = arith.constant dense<0.000000e+00> : vector<16x256xf32>
    %10 = tpu.matmul %3, %9, %cst_8 {dimension_numbers = #tpu.dot_dimension_numbers<[1], [0], [0], [1], [0, 0, 1, 1], [], []>} : vector<16x128xf32>, vector<128x256xf32>, vector<16x256xf32> -> vector<16x256xf32>
    %c0_9 = arith.constant 0 : index
    %c0_10 = arith.constant 0 : index
    %11 = vector.load %arg6[%c0_9, %c0_10] : memref<1x256xf32, #tpu.memory_space<vmem>>, vector<1x256xf32>
    %12 = vector.broadcast %11 : vector<1x256xf32> to vector<16x256xf32>
    %13 = arith.addf %10, %12 : vector<16x256xf32>
    %14 = arith.negf %8 : vector<16x256xf32>
    %15 = math.exp %14 : vector<16x256xf32>
    %cst_11 = arith.constant 1.000000e+00 : f32
    %16 = vector.broadcast %cst_11 : f32 to vector<16x256xf32>
    %17 = arith.addf %16, %15 : vector<16x256xf32>
    %18 = arith.divf %16, %17 : vector<16x256xf32>
    %19 = arith.mulf %13, %18 : vector<16x256xf32>
    %20 = arith.mulf %19, %13 : vector<16x256xf32>
    %c0_12 = arith.constant 0 : index
    %c0_13 = arith.constant 0 : index
    %21 = vector.load %arg11[%c0_12, %c0_13] : memref<16x128xf32, #tpu.memory_space<vmem>>, vector<16x128xf32>
    %c0_14 = arith.constant 0 : index
    %c0_15 = arith.constant 0 : index
    %22 = vector.load %arg7[%c0_14, %c0_15] : memref<256x128xf32, #tpu.memory_space<vmem>>, vector<256x128xf32>
    %cst_16 = arith.constant dense<0.000000e+00> : vector<16x128xf32>
    %23 = tpu.matmul %20, %22, %cst_16 {dimension_numbers = #tpu.dot_dimension_numbers<[1], [0], [0], [1], [0, 0, 1, 1], [], []>} : vector<16x256xf32>, vector<256x128xf32>, vector<16x128xf32> -> vector<16x128xf32>
    %24 = arith.addf %21, %23 : vector<16x128xf32>
    %c0_17 = arith.constant 0 : index
    %c0_18 = arith.constant 0 : index
    %25 = vector.load %arg11[%c0_17, %c0_18] : memref<16x128xf32, #tpu.memory_space<vmem>>, vector<16x128xf32>
    tpu.vector_store %arg11[%c0_17, %c0_18], %24 {strides = array<i32>} : memref<16x128xf32, #tpu.memory_space<vmem>>, vector<16x128xf32>,
    %c1_i32 = arith.constant 1 : i32
    %26 = arith.cmpi eq, %arg1, %c1_i32 : i32
    %27 = arith.extui %26 : i1 to i32
    %c0_i32_19 = arith.constant 0 : i32
    %28 = arith.cmpi ne, %27, %c0_i32_19 : i32
    scf.if %28 {
      %c0_20 = arith.constant 0 : index
      %c0_21 = arith.constant 0 : index
      %29 = vector.load %arg11[%c0_20, %c0_21] : memref<16x128xf32, #tpu.memory_space<vmem>>, vector<16x128xf32>
      %c0_22 = arith.constant 0 : index
      %c0_23 = arith.constant 0 : index
      %30 = vector.load %arg8[%c0_22, %c0_23] : memref<1x128xf32, #tpu.memory_space<vmem>>, vector<1x128xf32>
      %31 = vector.broadcast %30 : vector<1x128xf32> to vector<16x128xf32>
      %32 = arith.addf %29, %31 : vector<16x128xf32>
      %c0_24 = arith.constant 0 : index
      %c0_25 = arith.constant 0 : index
      %33 = vector.load %arg9[%c0_24, %c0_25] : memref<16x128xf32, #tpu.memory_space<vmem>>, vector<16x128xf32>
      %34 = arith.addf %32, %33 : vector<16x128xf32>
      %c0_26 = arith.constant 0 : index
      %c0_27 = arith.constant 0 : index
      %35 = vector.load %arg10[%c0_26, %c0_27] : memref<16x128xf32, #tpu.memory_space<vmem>>, vector<16x128xf32>
      tpu.vector_store %arg10[%c0_26, %c0_27], %34 {strides = array<i32>} : memref<16x128xf32, #tpu.memory_space<vmem>>, vector<16x128xf32>,
    } else {
    }
    return
  }
  func.func @transform_0(%arg0: i32, %arg1: i32) -> (i32, i32) {
    %c0_i32 = arith.constant 0 : i32
    %c0_i32_0 = arith.constant 0 : i32
    return %arg0, %c0_i32 : i32, i32
  }
  func.func @transform_1(%arg0: i32, %arg1: i32) -> (i32, i32) {
    %c0_i32 = arith.constant 0 : i32
    %c0_i32_0 = arith.constant 0 : i32
    return %c0_i32, %arg1 : i32, i32
  }
  func.func @transform_2(%arg0: i32, %arg1: i32) -> (i32, i32) {
    %c0_i32 = arith.constant 0 : i32
    %c0_i32_0 = arith.constant 0 : i32
    return %c0_i32, %arg1 : i32, i32
  }
  func.func @transform_3(%arg0: i32, %arg1: i32) -> (i32, i32) {
    %c0_i32 = arith.constant 0 : i32
    %c0_i32_0 = arith.constant 0 : i32
    return %c0_i32, %arg1 : i32, i32
  }
  func.func @transform_4(%arg0: i32, %arg1: i32) -> (i32, i32) {
    %c0_i32 = arith.constant 0 : i32
    %c0_i32_0 = arith.constant 0 : i32
    return %c0_i32, %arg1 : i32, i32
  }
  func.func @transform_5(%arg0: i32, %arg1: i32) -> (i32, i32) {
    %c0_i32 = arith.constant 0 : i32
    %c0_i32_0 = arith.constant 0 : i32
    return %arg1, %c0_i32 : i32, i32
  }
  func.func @transform_6(%arg0: i32, %arg1: i32) -> (i32, i32) {
    %c0_i32 = arith.constant 0 : i32
    %c0_i32_0 = arith.constant 0 : i32
    %c0_i32_1 = arith.constant 0 : i32
    return %c0_i32, %c0_i32_0 : i32, i32
  }
  func.func @transform_7(%arg0: i32, %arg1: i32) -> (i32, i32) {
    %c0_i32 = arith.constant 0 : i32
    %c0_i32_0 = arith.constant 0 : i32
    return %arg0, %c0_i32 : i32, i32
  }
  func.func @transform_8(%arg0: i32, %arg1: i32) -> (i32, i32) {
    %c0_i32 = arith.constant 0 : i32
    %c0_i32_0 = arith.constant 0 : i32
    return %arg0, %c0_i32 : i32, i32
  }
}

</mosaic_0001>

<bundles_post_ra>
// kernel: ffn_swiglu_forward.1
= control target key start
LH: loop header
LB: loop body
LE: loop exit
PB: predicated region body
PF: predicated region fallthrough
CT: control target
= control target key end

     0   :  { %s2043_s0 = inlined_call_operand.hbm [shape: f32[16,128], index: 0, kind: input, shape index: {}]   ;;  %s2044_s1 = inlined_call_operand.hbm [shape: f32[128,512], index: 1, kind: input, shape index: {}]   ;;  %s2045_s2 = inlined_call_operand.vmem [shape: f32[1,512], index: 2, kind: input, shape index: {}]   ;;  %s2046_s3 = inlined_call_operand.hbm [shape: f32[128,512], index: 3, kind: input, shape index: {}]   ;;  %s2047_s4 = inlined_call_operand.vmem [shape: f32[1,512], index: 4, kind: input, shape index: {}]   ;;  %s2048_s5 = inlined_call_operand.hbm [shape: f32[512,128], index: 5, kind: input, shape index: {}]   ;;  %s2049_s6 = inlined_call_operand.vmem [shape: f32[1,128], index: 6, kind: input, shape index: {}]   ;;  %s2050_s7 = inlined_call_operand.vmem [shape: f32[16,128], index: 7, kind: input, shape index: {}]   ;;  %s2051_s8 = inlined_call_operand.hbm [shape: f32[16,128], index: 8, kind: output, shape index: {}]  }
   0x1   :  { %2069 = sst [smem:[#allocation19_spill]] %s2044_s1 }
   0x2   :  { %2070 = sst [smem:[#allocation20_spill]] %s2050_s7 }
   0x3   :  { %2071 = sst [smem:[#allocation21_spill]] %s2051_s8 }
   0x4   :  { %13 = vsyncpa [#allocation4], 0 }
   0x5   :  { %14 = vsyncpa [#allocation7], 0 }
   0x6   :  { %16 = vsyncpa [#allocation7 + $0x1], 0 }
   0x7   :  { %17 = vsyncpa [#allocation10], 0 }
   0x8   :  { %19 = vsyncpa [#allocation10 + $0x1], 0 }
   0x9   :  { %20 = vsyncpa [#allocation5], 0  ;;  %s1633_s27 = smov 0   ;;  %s1635_s28 = smov 0  }
   0xa   :  { %s1637_s29 = smov 0   ;;  %s1639_s30 = smov 0  }
   0xb   :  { %s1641_s9 = smov 0   ;;  %s1643_s10 = smov 0  }
   0xc LB: > { %2072 = sst [smem:[#allocation16_spill]] %s1572_s10  ;;  %s35_s11 = sadd.s32 1, %s1568_s9  ;;  %s1572_s10 = sphi %s1643_s10, %s26_s10   ;;  %s1568_s9 = sphi %s1641_s9, %s2102_s9   ;;  %s1564_s30 = sphi %s1639_s30, %s2101_s30   ;;  %s1560_s29 = sphi %s1637_s29, %s2100_s29   ;;  %s1556_s28 = sphi %s1635_s28, %s2099_s28   ;;  %s1552_s27 = sphi %s1633_s27, %s2098_s27  }
   0xd   : > { %s71_s12 = sadd.s32 1, %s1560_s29  ;;  %p36_p0 = scmp.ge.s32.totalorder %s35_s11, 2 }
   0xe   : > { %p78_p1 = scmp.ne.s32.totalorder %s1560_s29, %s1556_s28  ;;  %p79_p2 = scmp.eq.s32.totalorder %s1572_s10, 0 }
   0xf   : > { %s2104_s11 = smov (%p36_p0, %s35_s11), 0  ;;  %p1287_p4 = scmp.lt.s32.totalorder %s1572_s10, 2 }
  0x10   : > { %2073 = sst [smem:[#allocation17_spill]] %s2104_s11  ;;  %p80_p3 = por %p79_p2, %p78_p1 }
  0x11   : > { %s68_s13 = ssub.s32 %s1568_s9, %s2104_s11  ;;  %s313_s14 = sand.u32 1, %s1572_s10  }
  0x12   : > { %p69_p5 = scmp.eq.s32.totalorder %s68_s13, 0  ;;  %s2052_s15 = sand.u32 1, %s1560_s29  }
  0x13   : > { %s1105_s16 = sshll.u32 %s1568_s9, 8  ;;  %s1681_s18 = sshll.u32 %s2052_s15, 8 }
  0x14   : > { %s1677_s17 = scalar_select %p69_p5, %s1560_s29, %s71_s12  }
  0x15   : > { %s2075_s1 = sld [smem:[#allocation19_spill]]  ;;  %p1690_p6 = pnand %p1287_p4, %p80_p3 }
  0x16   : > { %2074 = sst [smem:[#allocation18_spill]] %s1677_s17  ;;  %s317_s23 = scalar_lea.vmem [#allocation6], %s1681_s18 }
  0x17   : > { %s2076_s22 = scalar_select %p1690_p6, 1, 0 }
  0x18   : > { %s324_s24 = sshll.u32 %s317_s23, 4  ;;  %s1697_s25 = scalar_lea.sflag [#allocation7], %s313_s14  ;;  %s1695_s24 = int_to_ptr.vmem [resolvable:$true] %s324_s24 }
  0x19   : > { %p1703_p8 = pneg %p1690_p6 }
  0x1b   : > { %s1688_s21 = scalar_lea.hbm %s2075_s1, %s1105_s16  ;;  %s1371_s20 = scalar_lea.hbm %s2075_s1, 8192 }
  0x1c   : > { %s1366_s26 = scalar_lea.hbm %s1688_s21, 4096  ;;  %p1372_p11 = scmp.lt.u32.totalorder %s1688_s21, %s2075_s1 }
  0x1d   : > { %p1367_p7 = scmp.ne.s32.totalorder %s1688_s21, %s1366_s26  ;;  %p1373_p12 = scmp.lt.u32.totalorder %s1371_s20, %s1366_s26 }
  0x1e   : > { %s2077_s12 = scalar_select %p1703_p8, 1, 0 }
  0x1f   : > { %p1369_p9 = pnand %p1703_p8, %p1367_p7  ;;  %p1374_p13 = por %p1373_p12, %p1372_p11 }
  0x20   : > { %p1375_p0 = scmp.lt.u32.totalorder %s1366_s26, %s1688_s21 }
  0x21   : > { %p1370_p10 = pneg %p1369_p9 }
  0x22   : > { %p1376_p1 = por %p1375_p0, %p1374_p13 }
  0x24   : > { %p1377_p2 = pnand %p1376_p1, %p1370_p10 }
  0x26   : > { %1380 = shalt.err (!%p1377_p2)
}
  0x27   : > { %s1381_s14 = scalar_lea.vmem %s1695_s24, 4096  ;;  %s1574_s13 = smov [#allocation6]  }
  0x28   : > { %p1382_p3 = scmp.ne.s32.totalorder %s1695_s24, %s1381_s14  ;;  %s1386_s19 = sshll.u32 %s1574_s13, 4  ;;  %s1387_s19 = int_to_ptr.vmem [resolvable:$false] %s1386_s19 }
  0x29   : > { %s1388_s15 = scalar_lea.vmem %s1387_s19, 8192  ;;  %p1389_p7 = scmp.lt.s32.totalorder %s1695_s24, %s1387_s19 }
  0x2a   : > { %p1384_p4 = pnand %p1382_p3, %p1703_p8  ;;  %p1390_p9 = scmp.lt.s32.totalorder %s1388_s15, %s1381_s14 }
  0x2c   : > { %p1385_p5 = pneg %p1384_p4  ;;  %p1391_p11 = por %p1390_p9, %p1389_p7 }
  0x2e   : > { %p1392_p12 = pnand %p1391_p11, %p1385_p5 }
  0x30   : > { %1395 = shalt.err (!%p1392_p12)
}
  0x31   : > { %s2053_s26 = smov 512   ;;  %s2054_s20 = smov 256  }
  0x32   : > { %s2055_s23 = smov 16   ;;  %s1735_s19 = scalar_lea.hbm %s2046_s3, %s1105_s16 }
  0x33   : > { %1279 = dma.hbm_to_vmem [thread:$0]  (!%p1690_p6), %s1688_s21, 4096, %s1695_s24, %s1697_s25, %s2053_s26, %s2054_s20, %s2055_s23  }
  0x34   : > { %s1738_s15 = sadd.s32 4294967295, %s1572_s10   ;;  %p84_p10 = scmp.ne.s32.totalorder %s1556_s28, %s1552_s27 }
  0x35   : > { %p2058_p13 = scmp.eq.s32.totalorder %s1738_s15, 0  ;;  %p1074_p0 = scmp.ge.s32.totalorder %s1572_s10, 1 }
  0x36   : > { %p272_p1 = scmp.lt.s32.totalorder %s1572_s10, 3  ;;  %s1578_s16 = smov [#allocation3]  }
  0x37   : > { %p1747_p2 = por %p2058_p13, %p84_p10  ;;  %s287_s24 = sshll.u32 %s1578_s16, 4  ;;  %s288_s24 = int_to_ptr.vmem [resolvable:$true] %s287_s24 }
  0x38   : > { %p1751_p3 = pnand %p1074_p0, %p272_p1  ;;  %s346_s14 = scalar_lea.vmem [#allocation8], %s1681_s18 }
  0x39   : > { %s2078_s1 = scalar_select %p1747_p2, 1, 0 }
  0x3a   : > { %s2079_s21 = scalar_select %p1751_p3, 1, 0 }
  0x3b   : > { %p1272_p4 = pneg %p1751_p3  ;;  %s353_s13 = sshll.u32 %s346_s14, 4  ;;  %s1764_s13 = int_to_ptr.vmem [resolvable:$true] %s353_s13 }
  0x3c   : > { %s1396_s23 = scalar_lea.hbm %s2043_s0, 256 }
  0x3d   : > { %p1759_p5 = pnand %p1272_p4, %p2058_p13  ;;  %p1397_p7 = scmp.ne.s32.totalorder %s2043_s0, %s1396_s23 }
  0x3e   : > { %p1403_p10 = scmp.lt.u32.totalorder %s1396_s23, %s2043_s0 }
  0x3f   : > { %p1398_p9 = pneg %p1759_p5 }
  0x41   : > { %p1399_p11 = pnand %p1398_p9, %p1397_p7 }
  0x43   : > { %p1400_p12 = pneg %p1399_p11 }
  0x45   : > { %p1405_p0 = pnand %p1403_p10, %p1400_p12 }
  0x47   : > { %1408 = shalt.err (!%p1405_p0)
}
  0x48   : > { %s1409_s14 = scalar_lea.vmem %s288_s24, 256  ;;  %p1417_p2 = scmp.lt.s32.totalorder %s288_s24, %s288_s24 }
  0x49   : > { %p1410_p1 = scmp.ne.s32.totalorder %s288_s24, %s1409_s14  ;;  %p1418_p3 = scmp.lt.s32.totalorder %s1409_s14, %s1409_s14 }
  0x4b   : > { %p1412_p4 = pnand %p1410_p1, %p1398_p9  ;;  %p1419_p6 = por %p1418_p3, %p1417_p2 }
  0x4d   : > { %p1413_p13 = pneg %p1412_p4 }
  0x4f   : > { %p1420_p8 = pnand %p1419_p6, %p1413_p13 }
  0x51   : > { %1423 = shalt.err (!%p1420_p8)
}
  0x52   : > { %s2067_s11 = smov 128   ;;  %s2068_s10 = smov 8  }
  0x53   : > { %1275 = dma.hbm_to_vmem [thread:$0]  (!%p1759_p5), %s2043_s0, 256, %s288_s24, [#allocation4], %s2067_s11, %s2067_s11, %s2068_s10  }
  0x54   : > { %s1424_s20 = scalar_lea.hbm %s1735_s19, 4096  ;;  %p2081_p6 = scmp.ne.s32.totalorder %s2077_s12, 0 }
  0x55   : > { %p1425_p2 = scmp.ne.s32.totalorder %s1735_s19, %s1424_s20  ;;  %s1429_s14 = scalar_lea.hbm %s2046_s3, 8192 }
  0x56   : > { %p1430_p3 = scmp.lt.u32.totalorder %s1735_s19, %s2046_s3  ;;  %p1431_p7 = scmp.lt.u32.totalorder %s1429_s14, %s1424_s20 }
  0x57   : > { %p1427_p8 = pnand %p1425_p2, %p2081_p6  ;;  %p1433_p11 = scmp.lt.u32.totalorder %s1424_s20, %s1735_s19 }
  0x58   : > { %p1432_p9 = por %p1431_p7, %p1430_p3 }
  0x59   : > { %p1428_p13 = pneg %p1427_p8 }
  0x5a   : > { %p1434_p12 = por %p1433_p11, %p1432_p9 }
  0x5c   : > { %p1435_p10 = pnand %p1434_p12, %p1428_p13 }
  0x5e   : > { %1438 = shalt.err (!%p1435_p10)
}
  0x5f   : > { %s1439_s24 = scalar_lea.vmem %s1764_s13, 4096  ;;  %s1581_s27 = smov [#allocation8]  }
  0x60   : > { %p1440_p5 = scmp.ne.s32.totalorder %s1764_s13, %s1439_s24  ;;  %s1444_s17 = sshll.u32 %s1581_s27, 4  ;;  %s1445_s17 = int_to_ptr.vmem [resolvable:$false] %s1444_s17 }
  0x61   : > { %s1446_s7 = scalar_lea.vmem %s1445_s17, 8192  ;;  %p1447_p4 = scmp.lt.s32.totalorder %s1764_s13, %s1445_s17 }
  0x62   : > { %p1442_p0 = pnand %p1440_p5, %p2081_p6  ;;  %p1448_p2 = scmp.lt.s32.totalorder %s1446_s7, %s1439_s24 }
  0x64   : > { %p1443_p1 = pneg %p1442_p0  ;;  %p1449_p8 = por %p1448_p2, %p1447_p4 }
  0x66   : > { %p1450_p3 = pnand %p1449_p8, %p1443_p1 }
  0x68   : > { %1453 = shalt.err (!%p1450_p3)
}
  0x69   : > { %p2082_p13 = scmp.ne.s32.totalorder %s2076_s22, 0  ;;  %s2083_s8 = smov 16  }
  0x6a   : > { %s2084_s26 = smov 256   ;;  %s2085_s20 = smov 512  }
  0x6b   : > { %1282 = dma.hbm_to_vmem [thread:$0]  (!%p2082_p13), %s1735_s19, 4096, %s1764_s13, %s1697_s25, %s2085_s20, %s2084_s26, %s2083_s8  }
  0x6c   : > { %s1107_s23 = sshll.u32 %s1568_s9, 12  ;;  %s375_s16 = scalar_lea.vmem [#allocation9], %s1681_s18 }
  0x6d   : > { %s382_s14 = sshll.u32 %s375_s16, 4  ;;  %s1815_s17 = scalar_lea.hbm %s2048_s5, %s1107_s23  ;;  %s1817_s14 = int_to_ptr.vmem [resolvable:$true] %s382_s14 }
  0x6e   : > { %s2086_s7 = sand.u32 1, %s1560_s29   ;;  %s1454_s10 = scalar_lea.hbm %s1815_s17, 4096 }
  0x6f   : > { %s1821_s11 = scalar_lea.sflag [#allocation10], %s2086_s7  ;;  %p1455_p7 = scmp.ne.s32.totalorder %s1815_s17, %s1454_s10 }
  0x70   : > { %s1459_s19 = scalar_lea.hbm %s2048_s5, 8192  ;;  %p1460_p12 = scmp.lt.u32.totalorder %s1815_s17, %s2048_s5 }
  0x71   : > { %p1457_p9 = pnand %p1455_p7, %p2081_p6  ;;  %p1461_p10 = scmp.lt.u32.totalorder %s1459_s19, %s1454_s10 }
  0x72   : > { %p1463_p0 = scmp.lt.u32.totalorder %s1454_s10, %s1815_s17 }
  0x73   : > { %p1458_p11 = pneg %p1457_p9  ;;  %p1462_p5 = por %p1461_p10, %p1460_p12 }
  0x75   : > { %p1464_p1 = por %p1463_p0, %p1462_p5 }
  0x77   : > { %p1465_p4 = pnand %p1464_p1, %p1458_p11 }
  0x79   : > { %1468 = shalt.err (!%p1465_p4)
}
  0x7a   : > { %s1469_s26 = scalar_lea.vmem %s1817_s14, 4096  ;;  %s1582_s20 = smov [#allocation9]  }
  0x7b   : > { %p1470_p2 = scmp.ne.s32.totalorder %s1817_s14, %s1469_s26  ;;  %s1474_s23 = sshll.u32 %s1582_s20, 4  ;;  %s1475_s23 = int_to_ptr.vmem [resolvable:$false] %s1474_s23 }
  0x7c   : > { %s1476_s16 = scalar_lea.vmem %s1475_s23, 8192  ;;  %p1477_p7 = scmp.lt.s32.totalorder %s1817_s14, %s1475_s23 }
  0x7d   : > { %p1472_p8 = pnand %p1470_p2, %p2081_p6  ;;  %p1478_p9 = scmp.lt.s32.totalorder %s1476_s16, %s1469_s26 }
  0x7f   : > { %p1473_p3 = pneg %p1472_p8  ;;  %p1479_p12 = por %p1478_p9, %p1477_p7 }
  0x81   : > { %p1480_p10 = pnand %p1479_p12, %p1473_p3 }
  0x83   : > { %1483 = shalt.err (!%p1480_p10)
}
  0x84   : > { %s2087_s10 = smov 8   ;;  %s2088_s24 = smov 128  }
  0x85   : > { %1285 = dma.hbm_to_vmem [thread:$0]  (!%p2082_p13), %s1815_s17, 4096, %s1817_s14, %s1821_s11, %s2088_s24, %s2088_s24, %s2087_s10  }
  0x86   : > { %p2089_p6 = scmp.ne.s32.totalorder %s2079_s21, 0 }
  0x87   : > { %p2090_p11 = scmp.eq.s32.totalorder (!%p2089_p6), %s1738_s15, 0 }
  0x88   : > { %394 = sbr.rel (%p2089_p6) target bundleno = 708 (0x2c4), region = 52 }
  0x8f   : > { %1535 = dma.done.wait (%p2090_p11), [#allocation4], 256   ;;  %p2091_p5 = pmov %p2090_p11 }
  0x90   : > { %s400_s22 = sand.u32 1, %s1738_s15   ;;  %s402_s12 = sand.u32 1, %s1556_s28  }
  0x91   : > { %1537 = vsyncadd (%p2091_p5), [#allocation4], 4294967040  ;;  %s1089_s27 = sshll.u32 %s402_s12, 8  ;;  %s401_s7 = scalar_lea.sflag [#allocation7], %s400_s22 }
  0x92   : > { %s1856_s18 = scalar_lea.vmem [#allocation6], %s1089_s27  ;;  %p2092_p0 = scmp.ne.s32.totalorder %s2078_s1, 0 }
  0x94   : > { %1539 = dma.done.wait (%p2092_p0), %s401_s7, 8192  }
  0x95   : > { %1541 = vsyncadd (%p2092_p0), %s401_s7, 4294959104  ;;  %s1862_s21 = scalar_lea.vmem [#allocation8], %s1089_s27  ;;  %s419_s11 = scalar_lea.sflag [#allocation10], %s402_s12 }
  0x96   : > { %s1864_s14 = scalar_lea.vmem [#allocation9], %s1089_s27 }
  0x97   : > { %1543 = dma.done.wait (%p2092_p0), %s419_s11, 4096  }
  0x98   : > { %1545 = vsyncadd (%p2092_p0), %s419_s11, 4294963200  ;;  %s1092_s17 = sshll.u32 %s1564_s30, 1  ;;  %p1094_p1 = scmp.ne.s32.totalorder %s1564_s30, 0 }
  0x99   : > { %p476_p13 = scmp.lt.s32.totalorder %s1092_s17, 3  ;;  %v1583_v0 = vmov (!%p1094_p1), 0.0  }
  0x9a   : > { %497 = sbr.rel (%p1094_p1) target bundleno = 161 (0xa1), region = 72  ;;  %498 = vst [vmem:[#allocation2] sm:$0xff] (!%p1094_p1), %v1583_v0  ;;  %499 = vst [vmem:[#allocation2 + $0x8] sm:$0xff] (!%p1094_p1), %v1583_v0 }
  0x9b   : > { %s2106_s17 = smov (!%p476_p13, %s1092_s17), 3 }
  0x9c   : > { %s478_s13 = scalar_lea.vmem %s2045_s2, %s2106_s17  ;;  %s484_s20 = scalar_lea.vmem %s2047_s4, %s2106_s17 }
  0xa1 PF: > { %v503_v1 = vld [vmem:[%s1856_s18 + $0x8] sm:$0xff]  ;;  %v505_v2 = vld [vmem:[%s1856_s18 + $0x18] sm:$0xff]  ;;  %v502_v3 = vld [vmem:[%s1856_s18] sm:$0xff]  ;;  %v1584_v8 = vmov 0.0   ;;  %p1099_p4 = scmp.ne.s32.totalorder %s1564_s30, 1 }
  0xa2   : > { %v1146_v4 = vpack.c.bf16 %v505_v2, %v503_v1  ;;  %v504_v5 = vld [vmem:[%s1856_s18 + $0x10] sm:$0xff]  ;;  %v507_v6 = vld [vmem:[%s1856_s18 + $0x28] sm:$0xff]  ;;  %v509_v7 = vld [vmem:[%s1856_s18 + $0x38] sm:$0xff]  ;;  %610 = vmatprep.mubr.f32.mxu0 %v1584_v8  ;;  %731 = vmatprep.mubr.f32.mxu1 %v1584_v8  ;;  %s2093_s7 = sld [smem:[#allocation20_spill]] (!%p1099_p4) }
  0xa3   : > { %v1148_v9 = vpack.c.bf16 %v504_v5, %v502_v3  ;;  %v1150_v10 = vpack.c.bf16 %v509_v7, %v507_v6  ;;  %v506_v11 = vld [vmem:[%s1856_s18 + $0x20] sm:$0xff]  ;;  %v508_v12 = vld [vmem:[%s1856_s18 + $0x30] sm:$0xff]  ;;  %v511_v13 = vld [vmem:[%s1856_s18 + $0x48] sm:$0xff] }
  0xa4   : > { %1147 = vmatprep.subr.bf16.mxu0 %v1146_v4  ;;  %v513_v14 = vld [vmem:[%s1856_s18 + $0x58] sm:$0xff]  ;;  %v1152_v15 = vpack.c.bf16 %v508_v12, %v506_v11  ;;  %v510_v17 = vld [vmem:[%s1856_s18 + $0x40] sm:$0xff]  ;;  %v512_v18 = vld [vmem:[%s1856_s18 + $0x50] sm:$0xff] }
  0xa5   : > { %1149 = vmatpush1.bf16.msra.mxu0 %v1148_v9  ;;  %v1154_v16 = vpack.c.bf16 %v513_v14, %v511_v13  ;;  %v515_v19 = vld [vmem:[%s1856_s18 + $0x68] sm:$0xff]  ;;  %v517_v20 = vld [vmem:[%s1856_s18 + $0x78] sm:$0xff]  ;;  %v1156_v21 = vpack.c.bf16 %v512_v18, %v510_v17  ;;  %v514_v22 = vld [vmem:[%s1856_s18 + $0x60] sm:$0xff] }
  0xa6   : > { %1151 = vmatprep.subr.bf16.mxu0 %v1150_v10  ;;  %v516_v23 = vld [vmem:[%s1856_s18 + $0x70] sm:$0xff]  ;;  %v1158_v24 = vpack.c.bf16 %v517_v20, %v515_v19  ;;  %v519_v25 = vld [vmem:[%s1856_s18 + $0x88] sm:$0xff]  ;;  %v626_v27 = vld [vmem:[%s1862_s21 + $0x18] sm:$0xff] }
  0xa7   : > { %v624_v26 = vld [vmem:[%s1862_s21 + $0x8] sm:$0xff]  ;;  %v521_v28 = vld [vmem:[%s1856_s18 + $0x98] sm:$0xff]  ;;  %v623_v30 = vld [vmem:[%s1862_s21] sm:$0xff]  ;;  %v1160_v35 = vpack.c.bf16 %v516_v23, %v514_v22 }
  0xa8   : > { %v1178_v29 = vpack.c.bf16 %v626_v27, %v624_v26  ;;  %v625_v31 = vld [vmem:[%s1862_s21 + $0x10] sm:$0xff]  ;;  %v518_v32 = vld [vmem:[%s1856_s18 + $0x80] sm:$0xff]  ;;  %v523_v36 = vld [vmem:[%s1856_s18 + $0xa8] sm:$0xff]  ;;  %v1162_v40 = vpack.c.bf16 %v521_v28, %v519_v25 }
  0xa9   : > { %1153 = vmatpush1.bf16.msra.mxu0 %v1152_v15  ;;  %v520_v33 = vld [vmem:[%s1856_s18 + $0x90] sm:$0xff]  ;;  %v1180_v34 = vpack.c.bf16 %v625_v31, %v623_v30  ;;  %v628_v37 = vld [vmem:[%s1862_s21 + $0x28] sm:$0xff]  ;;  %v630_v38 = vld [vmem:[%s1862_s21 + $0x38] sm:$0xff] }
  0xaa   : > { %1155 = vmatprep.subr.bf16.mxu0 %v1154_v16  ;;  %1179 = vmatprep.subr.bf16.mxu1 %v1178_v29  ;;  %v627_v39 = vld [vmem:[%s1862_s21 + $0x20] sm:$0xff]  ;;  %v525_v41 = vld [vmem:[%s1856_s18 + $0xb8] sm:$0xff]  ;;  %v1182_v42 = vpack.c.bf16 %v630_v38, %v628_v37  ;;  %v629_v43 = vld [vmem:[%s1862_s21 + $0x30] sm:$0xff]  ;;  %v1164_v52 = vpack.c.bf16 %v520_v33, %v518_v32 }
  0xab   : > { %1181 = vmatpush1.bf16.msra.mxu1 %v1180_v34  ;;  %v632_v44 = vld [vmem:[%s1862_s21 + $0x48] sm:$0xff]  ;;  %v1184_v45 = vpack.c.bf16 %v629_v43, %v627_v39  ;;  %v634_v46 = vld [vmem:[%s1862_s21 + $0x58] sm:$0xff]  ;;  %v631_v47 = vld [vmem:[%s1862_s21 + $0x40] sm:$0xff]  ;;  %v1166_v53 = vpack.c.bf16 %v525_v41, %v523_v36 }
  0xac   : > { %v633_v48 = vld [vmem:[%s1862_s21 + $0x50] sm:$0xff]  ;;  %1183 = vmatprep.subr.bf16.mxu1 %v1182_v42  ;;  %v1186_v49 = vpack.c.bf16 %v634_v46, %v632_v44  ;;  %v636_v50 = vld [vmem:[%s1862_s21 + $0x68] sm:$0xff]  ;;  %v638_v51 = vld [vmem:[%s1862_s21 + $0x78] sm:$0xff] }
  0xad   : > { %1157 = vmatpush1.bf16.msra.mxu0 %v1156_v21  ;;  %v522_v54 = vld [vmem:[%s1856_s18 + $0xa0] sm:$0xff]  ;;  %v524_v55 = vld [vmem:[%s1856_s18 + $0xb0] sm:$0xff]  ;;  %v527_v56 = vld [vmem:[%s1856_s18 + $0xc8] sm:$0xff]  ;;  %v1188_v57 = vpack.c.bf16 %v633_v48, %v631_v47  ;;  %v1190_v59 = vpack.c.bf16 %v638_v51, %v636_v50 }
  0xae   : > { %1159 = vmatprep.subr.bf16.mxu0 %v1158_v24  ;;  %v529_v58 = vld [vmem:[%s1856_s18 + $0xd8] sm:$0xff]  ;;  %v635_v60 = vld [vmem:[%s1862_s21 + $0x60] sm:$0xff]  ;;  %v637_v61 = vld [vmem:[%s1862_s21 + $0x70] sm:$0xff]  ;;  %v1168_v0 = vpack.c.bf16 %v524_v55, %v522_v54 }
  0xaf   : > { %1185 = vmatpush1.bf16.msra.mxu1 %v1184_v45  ;;  %v640_v62 = vld [vmem:[%s1862_s21 + $0x88] sm:$0xff]  ;;  %v642_v63 = vld [vmem:[%s1862_s21 + $0x98] sm:$0xff]  ;;  %v1170_v1 = vpack.c.bf16 %v529_v58, %v527_v56  ;;  %v526_v2 = vld [vmem:[%s1856_s18 + $0xc0] sm:$0xff]  ;;  %v1192_v5 = vpack.c.bf16 %v637_v61, %v635_v60 }
  0xb0   : > { %1187 = vmatprep.subr.bf16.mxu1 %v1186_v49  ;;  %v528_v3 = vld [vmem:[%s1856_s18 + $0xd0] sm:$0xff]  ;;  %v531_v4 = vld [vmem:[%s1856_s18 + $0xe8] sm:$0xff]  ;;  %v533_v6 = vld [vmem:[%s1856_s18 + $0xf8] sm:$0xff]  ;;  %v1194_v7 = vpack.c.bf16 %v642_v63, %v640_v62 }
  0xb1   : > { %1161 = vmatpush1.bf16.msra.mxu0 %v1160_v35  ;;  %v639_v9 = vld [vmem:[%s1862_s21 + $0x80] sm:$0xff]  ;;  %v641_v10 = vld [vmem:[%s1862_s21 + $0x90] sm:$0xff]  ;;  %v644_v11 = vld [vmem:[%s1862_s21 + $0xa8] sm:$0xff]  ;;  %v1172_v13 = vpack.c.bf16 %v528_v3, %v526_v2  ;;  %v1174_v14 = vpack.c.bf16 %v533_v6, %v531_v4 }
  0xb2   : > { %1163 = vmatprep.subr.bf16.mxu0 %v1162_v40  ;;  %v646_v12 = vld [vmem:[%s1862_s21 + $0xb8] sm:$0xff]  ;;  %v530_v15 = vld [vmem:[%s1856_s18 + $0xe0] sm:$0xff]  ;;  %v532_v16 = vld [vmem:[%s1856_s18 + $0xf0] sm:$0xff]  ;;  %v1196_v17 = vpack.c.bf16 %v641_v10, %v639_v9 }
  0xb3   : > { %1189 = vmatpush1.bf16.msra.mxu1 %v1188_v57  ;;  %v1198_v18 = vpack.c.bf16 %v646_v12, %v644_v11  ;;  %v643_v19 = vld [vmem:[%s1862_s21 + $0xa0] sm:$0xff]  ;;  %v645_v20 = vld [vmem:[%s1862_s21 + $0xb0] sm:$0xff]  ;;  %v648_v21 = vld [vmem:[%s1862_s21 + $0xc8] sm:$0xff]  ;;  %v1176_v23 = vpack.c.bf16 %v532_v16, %v530_v15 }
  0xb4   : > { %1191 = vmatprep.subr.bf16.mxu1 %v1190_v59  ;;  %v650_v22 = vld [vmem:[%s1862_s21 + $0xd8] sm:$0xff]  ;;  %v1200_v24 = vpack.c.bf16 %v645_v20, %v643_v19  ;;  %v647_v26 = vld [vmem:[%s1862_s21 + $0xc0] sm:$0xff]  ;;  %v649_v27 = vld [vmem:[%s1862_s21 + $0xd0] sm:$0xff] }
  0xb5   : > { %1165 = vmatpush1.bf16.msra.mxu0 %v1164_v52  ;;  %v1202_v25 = vpack.c.bf16 %v650_v22, %v648_v21  ;;  %v652_v28 = vld [vmem:[%s1862_s21 + $0xe8] sm:$0xff]  ;;  %v654_v29 = vld [vmem:[%s1862_s21 + $0xf8] sm:$0xff]  ;;  %v500_v30 = vld [vmem:[#allocation3] sm:$0xff]  ;;  %v1204_v31 = vpack.c.bf16 %v649_v27, %v647_v26  ;;  %v536_v21 = vlaneseq }
  0xb6   : > { %1167 = vmatprep.subr.bf16.mxu0 %v1166_v53  ;;  %v1206_v32 = vpack.c.bf16 %v654_v29, %v652_v28  ;;  %v651_v33 = vld [vmem:[%s1862_s21 + $0xe0] sm:$0xff]  ;;  %v653_v34 = vld [vmem:[%s1862_s21 + $0xf0] sm:$0xff]  ;;  %v501_v35 = vld [vmem:[#allocation3 + $0x8] sm:$0xff] }
  0xb7   : > { %1193 = vmatpush1.bf16.msra.mxu1 %v1192_v5  ;;  %v1208_v36 = vpack.c.bf16 %v653_v34, %v651_v33  ;;  %v794_v37 = vld [vmem:[%s1864_s14 + $0x80] sm:$0xff]  ;;  %v795_v38 = vld [vmem:[%s1864_s14 + $0x88] sm:$0xff]  ;;  %v796_v43 = vld [vmem:[%s1864_s14 + $0x90] sm:$0xff]  ;;  %v537_v22 = vshrl.u32 %v536_v21, 7 }
  0xb8   : > { %1195 = vmatprep.subr.bf16.mxu1 %v1194_v7  ;;  %v1210_v39 = vpack.c.bf16 %v795_v38, %v794_v37  ;;  %v778_v40 = vld [vmem:[%s1864_s14] sm:$0xff]  ;;  %v779_v41 = vld [vmem:[%s1864_s14 + $0x8] sm:$0xff]  ;;  %v797_v44 = vld [vmem:[%s1864_s14 + $0x98] sm:$0xff] }
  0xb9   : > { %1169 = vmatpush1.bf16.msra.mxu0 %v1168_v0  ;;  %v1212_v42 = vpack.c.bf16 %v779_v41, %v778_v40  ;;  %v1214_v45 = vpack.c.bf16 %v797_v44, %v796_v43  ;;  %v781_v46 = vld [vmem:[%s1864_s14 + $0x18] sm:$0xff]  ;;  %v798_v48 = vld [vmem:[%s1864_s14 + $0xa0] sm:$0xff]  ;;  %v799_v49 = vld [vmem:[%s1864_s14 + $0xa8] sm:$0xff] }
  0xba   : > { %1171 = vmatprep.subr.bf16.mxu0 %v1170_v1  ;;  %v1218_v50 = vpack.c.bf16 %v799_v49, %v798_v48  ;;  %v782_v51 = vld [vmem:[%s1864_s14 + $0x20] sm:$0xff]  ;;  %v783_v52 = vld [vmem:[%s1864_s14 + $0x28] sm:$0xff]  ;;  %v800_v54 = vld [vmem:[%s1864_s14 + $0xb0] sm:$0xff] }
  0xbb   : > { %1197 = vmatpush1.bf16.msra.mxu1 %v1196_v17  ;;  %v1220_v53 = vpack.c.bf16 %v783_v52, %v782_v51  ;;  %v801_v55 = vld [vmem:[%s1864_s14 + $0xb8] sm:$0xff]  ;;  %v784_v57 = vld [vmem:[%s1864_s14 + $0x30] sm:$0xff]  ;;  %v802_v60 = vld [vmem:[%s1864_s14 + $0xc0] sm:$0xff] }
  0xbc   : > { %1199 = vmatprep.subr.bf16.mxu1 %v1198_v18  ;;  %v1222_v56 = vpack.c.bf16 %v801_v55, %v800_v54  ;;  %v785_v58 = vld [vmem:[%s1864_s14 + $0x38] sm:$0xff]  ;;  %v803_v61 = vld [vmem:[%s1864_s14 + $0xc8] sm:$0xff]  ;;  %v786_v63 = vld [vmem:[%s1864_s14 + $0x40] sm:$0xff] }
  0xbd   : > { %1173 = vmatpush1.bf16.msra.mxu0 %v1172_v13  ;;  %v1224_v59 = vpack.c.bf16 %v785_v58, %v784_v57  ;;  %v1226_v62 = vpack.c.bf16 %v803_v61, %v802_v60  ;;  %v787_v0 = vld [vmem:[%s1864_s14 + $0x48] sm:$0xff]  ;;  %v804_v2 = vld [vmem:[%s1864_s14 + $0xd0] sm:$0xff]  ;;  %v805_v3 = vld [vmem:[%s1864_s14 + $0xd8] sm:$0xff] }
  0xbe   : > { %1175 = vmatprep.subr.bf16.mxu0 %v1174_v14  ;;  %v1228_v1 = vpack.c.bf16 %v787_v0, %v786_v63  ;;  %v1230_v4 = vpack.c.bf16 %v805_v3, %v804_v2  ;;  %v788_v5 = vld [vmem:[%s1864_s14 + $0x50] sm:$0xff]  ;;  %v789_v6 = vld [vmem:[%s1864_s14 + $0x58] sm:$0xff]  ;;  %v806_v9 = vld [vmem:[%s1864_s14 + $0xe0] sm:$0xff] }
  0xbf   : > { %1201 = vmatpush1.bf16.msra.mxu1 %v1200_v24  ;;  %v1232_v7 = vpack.c.bf16 %v789_v6, %v788_v5  ;;  %v807_v10 = vld [vmem:[%s1864_s14 + $0xe8] sm:$0xff]  ;;  %v790_v12 = vld [vmem:[%s1864_s14 + $0x60] sm:$0xff]  ;;  %v808_v15 = vld [vmem:[%s1864_s14 + $0xf0] sm:$0xff] }
  0xc0   : > { %1203 = vmatprep.subr.bf16.mxu1 %v1202_v25  ;;  %v1234_v11 = vpack.c.bf16 %v807_v10, %v806_v9  ;;  %v791_v13 = vld [vmem:[%s1864_s14 + $0x68] sm:$0xff]  ;;  %v809_v16 = vld [vmem:[%s1864_s14 + $0xf8] sm:$0xff]  ;;  %v792_v18 = vld [vmem:[%s1864_s14 + $0x70] sm:$0xff]  ;;  %v542_v25 = vsub.s32 1, %v537_v22 }
  0xc1   : > { %1177 = vmatpush1.bf16.msra.mxu0 %v1176_v23  ;;  %v1236_v14 = vpack.c.bf16 %v791_v13, %v790_v12  ;;  %v1238_v17 = vpack.c.bf16 %v809_v16, %v808_v15  ;;  %v793_v19 = vld [vmem:[%s1864_s14 + $0x78] sm:$0xff]  ;;  %v538_v23 = vsub.s32 0, %v537_v22  ;;  %v534_v24 = vld [vmem:[%s478_s13] sm:$0x3]  ;;  %v777_v13 = vld [vmem:[#allocation2 + $0x8] sm:$0xff] }
  0xc2   : > { %1211 = vmatprep.subr.bf16.mxu0 %v1210_v39  ;;  %v1240_v20 = vpack.c.bf16 %v793_v19, %v792_v18  ;;  %v543_v27 = vrot.slane %v534_v24, %v542_v25  ;;  %v1100_v18 = vld [vmem:[%s2049_s6] ss:$0 sm:$0xff] (!%p1099_p4)  ;;  %v905_v22 = vld [vmem:[%s2093_s7 + $0x8] sm:$0xff] (!%p1099_p4) }
  0xc3   : > { %1205 = vmatpush1.bf16.msra.mxu1 %v1204_v31  ;;  %v539_v26 = vrot.slane %v534_v24, %v538_v23  ;;  %v904_v19 = vld [vmem:[%s2093_s7] sm:$0xff] (!%p1099_p4) }
  0xc4   : > { %611 = vmatmul.mubr.f32.vlgmr.msra.gmra.mrb[0].mxu0 %v500_v30  ;;  %1207 = vmatprep.subr.bf16.mxu1 %v1206_v32 }
  0xc5   : > { %616 = vmatprep.mubr.f32.mxu0 %v1584_v8  ;;  %1213 = vmatpush3.bf16.msra.mxu0 %v1212_v42 }
  0xc6   : > { %1215 = vmatprep.subr.bf16.mxu0 %v1214_v45 }
  0xc7   : > { %1209 = vmatpush1.bf16.msra.mxu1 %v1208_v36 }
  0xc8   : > { %617 = vmatmul.mubr.f32.gmra.mrb[2].mxu0 %v501_v35  ;;  %1242 = vmatprep.subr.bf16.mxu1 %v1210_v39 }
  0xca   : > { %732 = vmatmul.mubr.f32.vlgmr.msra.gmra.mrb[0].mxu1 %v500_v30 }
  0xcb   : > { %737 = vmatprep.mubr.f32.mxu1 %v1584_v8  ;;  %1250 = vmatpush3.bf16.msra.mxu1 %v1212_v42  ;;  %v780_v8 = vld [vmem:[%s1864_s14 + $0x10] sm:$0xff] }
  0xcc   : > { %v1216_v47 = vpack.c.bf16 %v781_v46, %v780_v8  ;;  %1243 = vmatprep.subr.bf16.mxu1 %v1214_v45 }
  0xce   : > { %738 = vmatmul.mubr.f32.gmra.mrb[2].mxu1 %v501_v35  ;;  %1217 = vmatpush3.bf16.msra.mxu0 %v1216_v47 }
  0xcf   : > { %1251 = vmatpush3.bf16.msra.mxu1 %v1216_v47  ;;  %1219 = vmatprep.subr.bf16.mxu0 %v1218_v50  ;;  %v655_v47 = vld [vmem:[%s484_s20] sm:$0x3] }
  0xd0   : > { %1244 = vmatprep.subr.bf16.mxu1 %v1218_v50  ;;  %v660_v52 = vrot.slane %v655_v47, %v538_v23 }
  0xd2   : > { %1221 = vmatpush3.bf16.msra.mxu0 %v1220_v53 }
  0xd3   : > { %1252 = vmatpush3.bf16.msra.mxu1 %v1220_v53  ;;  %1223 = vmatprep.subr.bf16.mxu0 %v1222_v56  ;;  %v664_v53 = vrot.slane %v655_v47, %v542_v25 }
  0xd4   : > { %1245 = vmatprep.subr.bf16.mxu1 %v1222_v56 }
  0xd6   : > { %1225 = vmatpush3.bf16.msra.mxu0 %v1224_v59 }
  0xd7   : > { %1253 = vmatpush3.bf16.msra.mxu1 %v1224_v59  ;;  %1227 = vmatprep.subr.bf16.mxu0 %v1226_v62 }
  0xd8   : > { %1246 = vmatprep.subr.bf16.mxu1 %v1226_v62 }
  0xda   : > { %1229 = vmatpush3.bf16.msra.mxu0 %v1228_v1 }
  0xdb   : > { %1254 = vmatpush3.bf16.msra.mxu1 %v1228_v1  ;;  %1231 = vmatprep.subr.bf16.mxu0 %v1230_v4 }
  0xdc   : > { %1247 = vmatprep.subr.bf16.mxu1 %v1230_v4 }
  0xde   : > { %1233 = vmatpush3.bf16.msra.mxu0 %v1232_v7 }
  0xdf   : > { %1255 = vmatpush3.bf16.msra.mxu1 %v1232_v7  ;;  %1235 = vmatprep.subr.bf16.mxu0 %v1234_v11  ;;  %v776_v7 = vld [vmem:[#allocation2] sm:$0xff] }
  0xe0   : > { %1248 = vmatprep.subr.bf16.mxu1 %v1234_v11 }
  0xe2   : > { %1237 = vmatpush3.bf16.msra.mxu0 %v1236_v14 }
  0xe3   : > { %1256 = vmatpush3.bf16.msra.mxu1 %v1236_v14  ;;  %1239 = vmatprep.subr.bf16.mxu0 %v1238_v17 }
  0xe4   : > { %1249 = vmatprep.subr.bf16.mxu1 %v1238_v17 }
  0xe6   : > { %1241 = vmatpush3.bf16.msra.mxu0 %v1240_v20 }
  0xe7   : > { %1257 = vmatpush3.bf16.msra.mxu1 %v1240_v20 }
 0x197   : > { %v612_v28 = vpop.f32.mrb[0].mxu0 }
 0x198   : > { %v613_v29 = vadd.f32 %v612_v28, %v539_v26  ;;  %v614_v30 = vpop.f32.mrb[1].mxu0 }
 0x199   : > { %v615_v31 = vadd.f32 %v614_v30, %v543_v27 }
 0x19a   : > { %v1095_v32 = vmul.f32 -1.442695, %v613_v29 }
 0x19b   : > { %v1096_v33 = vmul.f32 -1.442695, %v615_v31  ;;  %v618_v34 = vpop.f32.mrb[2].mxu0 }
 0x19c   : > { %1350 = vpow2.f32 %v1095_v32  ;;  %v619_v35 = vadd.f32 %v618_v34, %v539_v26  ;;  %v620_v36 = vpop.f32.mrb[3].mxu0 }
 0x19d   : > { %1352 = vpow2.f32 %v1096_v33  ;;  %v621_v37 = vadd.f32 %v620_v36, %v543_v27  ;;  %v733_v40 = vpop.f32.mrb[0].mxu1 }
 0x19e   : > { %v1097_v38 = vmul.f32 -1.442695, %v619_v35  ;;  %v735_v41 = vpop.f32.mrb[1].mxu1  ;;  %v734_v54 = vadd.f32 %v733_v40, %v660_v52 }
 0x19f   : > { %v1098_v39 = vmul.f32 -1.442695, %v621_v37  ;;  %v736_v55 = vadd.f32 %v735_v41, %v664_v53 }
 0x1a0   : > { %1354 = vpow2.f32 %v1097_v38 }
 0x1a1   : > { %1356 = vpow2.f32 %v1098_v39  ;;  %v739_v42 = vpop.f32.mrb[2].mxu1 }
 0x1a2   : > { %v741_v43 = vpop.f32.mrb[3].mxu1  ;;  %v740_v59 = vadd.f32 %v739_v42, %v660_v52 }
 0x1a3   : > { %v742_v61 = vadd.f32 %v741_v43, %v664_v53 }
 0x1a6   : > { %v1351_v44 = vpop.eup %1350 }
 0x1a7   : > { %v1353_v45 = vpop.eup %1352  ;;  %v756_v8 = vadd.f32 1.0, %v1351_v44 }
 0x1a8   : > { %v757_v46 = vadd.f32 1.0, %v1353_v45 }
 0x1a9   : > { %1358 = vrcp.f32 %v756_v8 }
 0x1aa   : > { %v1355_v48 = vpop.eup %1354  ;;  %1360 = vrcp.f32 %v757_v46 }
 0x1ab   : > { %v1357_v49 = vpop.eup %1356  ;;  %v758_v50 = vadd.f32 1.0, %v1355_v48 }
 0x1ac   : > { %v759_v51 = vadd.f32 1.0, %v1357_v49 }
 0x1ad   : > { %1362 = vrcp.f32 %v758_v50 }
 0x1ae   : > { %1364 = vrcp.f32 %v759_v51 }
 0x1b3   : > { %v1359_v56 = vpop.eup %1358 }
 0x1b4   : > { %v1361_v57 = vpop.eup %1360  ;;  %v768_v58 = vmul.f32 %v1359_v56, %v734_v54 }
 0x1b5   : > { %v769_v60 = vmul.f32 %v1361_v57, %v736_v55 }
 0x1b6   : > { %v772_v62 = vmul.f32 %v768_v58, %v734_v54 }
 0x1b7   : > { %v1363_v63 = vpop.eup %1362  ;;  %v773_v0 = vmul.f32 %v769_v60, %v736_v55 }
 0x1b8   : > { %v1365_v1 = vpop.eup %1364  ;;  %v770_v2 = vmul.f32 %v1363_v63, %v740_v59 }
 0x1b9   : > { %v771_v3 = vmul.f32 %v1365_v1, %v742_v61  ;;  %874 = vmatprep.mubr.f32.mxu0 %v773_v0 }
 0x1ba   : > { %v774_v4 = vmul.f32 %v770_v2, %v740_v59  ;;  %875 = vmatmul.mubr.f32.vlgmr.msra.gmra.mrb[4].mxu0 %v772_v62 }
 0x1bb   : > { %v775_v5 = vmul.f32 %v771_v3, %v742_v61 }
 0x1bd   : > { %879 = vmatprep.mubr.f32.mxu1 %v775_v5 }
 0x1be   : > { %880 = vmatmul.mubr.f32.vlgmr.msra.gmra.mrb[4].mxu1 %v774_v4 }
 0x28d   : > { %v1140_v6 = vpop.f32.mrb[4].mxu0 }
 0x28e   : > { %v1141_v9 = vpop.f32.mrb[5].mxu0 }
 0x28f   : > { %v1142_v10 = vadd.f32 %v1141_v9, %v1140_v6 }
 0x291   : > { %v885_v11 = vadd.f32 %v1142_v10, %v776_v7  ;;  %v1143_v12 = vpop.f32.mrb[4].mxu1  ;;  %892 = sbr.rel (%p1099_p4) target bundleno = 676 (0x2a4), region = 76 }
 0x292   : > { %v1144_v14 = vpop.f32.mrb[5].mxu1 }
 0x293   : > { %887 = vst [vmem:[#allocation2] sm:$0xff] %v885_v11  ;;  %v1145_v15 = vadd.f32 %v1144_v14, %v1143_v12 }
 0x295   : > { %v886_v16 = vadd.f32 %v1145_v15, %v777_v13 }
 0x297   : > { %888 = vst [vmem:[#allocation2 + $0x8] sm:$0xff] %v886_v16 }
 0x29a   : > { %v893_v17 = vld [vmem:[#allocation2] sm:$0xff] }
 0x29b   : > { %v902_v20 = vadd.f32 %v1100_v18, %v893_v17 }
 0x29d   : > { %v906_v24 = vadd.f32 %v904_v19, %v902_v20 }
 0x29e   : > { %v894_v21 = vld [vmem:[#allocation2 + $0x8] sm:$0xff] }
 0x29f   : > { %v903_v23 = vadd.f32 %v1100_v18, %v894_v21  ;;  %908 = vst [vmem:[#allocation11] sm:$0xff] %v906_v24 }
 0x2a1   : > { %v907_v25 = vadd.f32 %v905_v22, %v903_v23 }
 0x2a3   : > { %909 = vst [vmem:[#allocation11 + $0x8] sm:$0xff] %v907_v25 }
 0x2a4 PF: > { %p1289_p2 = scmp.eq.s32.totalorder %s1738_s15, 1  ;;  %s1585_s30 = smov [#allocation11]  }
 0x2a5   : > { %s919_s11 = sshll.u32 %s1585_s30, 4  ;;  %s920_s11 = int_to_ptr.vmem [resolvable:$true] %s919_s11 }
 0x2a6   : > { %s1484_s14 = scalar_lea.vmem %s920_s11, 256  ;;  %p1491_p9 = scmp.lt.s32.totalorder %s920_s11, %s920_s11 }
 0x2a7   : > { %p1485_p8 = scmp.ne.s32.totalorder %s920_s11, %s1484_s14  ;;  %p1492_p12 = scmp.lt.s32.totalorder %s1484_s14, %s1484_s14 }
 0x2a9   : > { %p1486_p3 = pnand %p1485_p8, %p1289_p2  ;;  %p1493_p10 = por %p1492_p12, %p1491_p9 }
 0x2ab   : > { %p1487_p7 = pneg %p1486_p3 }
 0x2ad   : > { %p1494_p6 = pnand %p1493_p10, %p1487_p7 }
 0x2af   : > { %1497 = shalt.err (!%p1494_p6)
}
 0x2b0   : > { %s2094_s19 = sld [smem:[#allocation21_spill]] }
 0x2b6   : > { %s1498_s13 = scalar_lea.hbm %s2094_s19, 256 }
 0x2b7   : > { %p1499_p11 = scmp.ne.s32.totalorder %s2094_s19, %s1498_s13  ;;  %p1504_p13 = scmp.lt.u32.totalorder %s1498_s13, %s2094_s19 }
 0x2b9   : > { %p1500_p5 = pnand %p1499_p11, %p1289_p2 }
 0x2bb   : > { %p1501_p0 = pneg %p1500_p5 }
 0x2bd   : > { %p1506_p1 = pnand %p1504_p13, %p1501_p0 }
 0x2bf   : > { %1509 = shalt.err (!%p1506_p1)
}
 0x2c0   : > { %s1586_s23 = smov 128   ;;  %s1587_s16 = smov 8  }
 0x2c1   : > { %1269 = dma.vmem_to_hbm [thread:$0]  (%p1289_p2), %s920_s11, 256, %s2094_s19, [#allocation5], %s1586_s23, %s1586_s23, %s1587_s16  }
 0x2c2   : > { %1547 = dma.done.wait (%p1289_p2), [#allocation5], 256  }
 0x2c3   : > { %1549 = vsyncadd (%p1289_p2), [#allocation5], 4294967040 }
 0x2c4 PF: > { %s2095_s22 = sld [smem:[#allocation16_spill]]  ;;  %s2096_s12 = sld [smem:[#allocation18_spill]] }
 0x2c5   : > { %s2097_s18 = sld [smem:[#allocation17_spill]]  ;;  %s2098_s27 = smov %s1556_s28 }
 0x2c6   : > { %s2099_s28 = smov %s1560_s29  ;;  %s2101_s30 = smov %s1568_s9 }
 0x2ca   : > { %s26_s10 = sadd.s32 1, %s2095_s22   ;;  %s2100_s29 = smov %s2096_s12 }
 0x2cb   : > { %p23_p4 = scmp.ge.s32.totalorder %s26_s10, 4   ;;  %s2102_s9 = smov %s2097_s18 }
 0x2cd   :  { %25 = sbr.rel (!%p23_p4) target bundleno = 12 (0xc), region = 137 }
 0x2d4   :  { %935 = vsyncpa [#allocation4], 1 }
 0x2d5   :  { %937 = vsyncpa [#allocation4 + $0x1], 1 }
 0x2d6   :  { %938 = vsyncpa [#allocation7], 1 }
 0x2d7   :  { %940 = vsyncpa [#allocation7 + $0x1], 1 }
 0x2d8   :  { %941 = vsyncpa [#allocation10], 1 }
 0x2d9   :  { %943 = vsyncpa [#allocation10 + $0x1], 1 }
 0x2da   :  { %944 = vsyncpa [#allocation5], 1 }
 0x2db   :  { %946 = vsyncpa [#allocation5 + $0x1], 1 }

</bundles_post_ra>
